<compile_context>
chip_gen: v7x
topology: tpu7x:2x2x1
jax: 0.10.0
libtpu: 0.0.40
codegen_flags: <defaults>
</compile_context>

<pallas_src>
import jax
import jax.numpy as jnp
from jax.experimental import pallas as pl
from jax.experimental.pallas import tpu as pltpu


_VMEM_CAP_BYTES = 56 * 1024 * 1024   # conservative: v7x has 64 MiB/TC; v5e/v6e have 128 MiB


def _round_up(x, m):
    return ((x + m - 1) // m) * m


def _prep(x, rows, cols, dtype):
    """Cast (if needed) then pad: at most one extra HBM pass, none when aligned."""
    if x.dtype != dtype:
        x = x.astype(dtype)
    pr, pc = rows - x.shape[0], cols - x.shape[1]
    if pr or pc:
        x = jnp.pad(x, ((0, pr), (0, pc)))
    return x


def _linear_kernel(h_ref, wt_ref, o_ref):
    """HW = H @ W^T (only used when in_feats > out_feats, path B)."""
    o_ref[...] = jnp.dot(h_ref[...], wt_ref[...],
                         preferred_element_type=jnp.float32).astype(o_ref.dtype)


def _make_agg_kernel(*, n_nodes, tm, tk, n_row_tiles, n_k_tiles,
                     apply_weight, emit_mean, x_resident, mask_rows):
    """acc += A_tile @ X_tile over the reduction axis; epilogue on the last k step.

    X is either H (apply_weight=True -> epilogue does @W^T + b) or the precomputed
    HW (apply_weight=False -> epilogue only adds bias).  When emit_mean, per-row-tile
    (masked) column sums are an extra output so mean_nodes is fused.
    All pl.program_id calls happen at the top level of the kernel (interpret-safe).
    """

    def kernel(*refs):
        it = iter(refs)
        a_ref = next(it)
        x_ref = next(it)
        wt_ref = next(it) if apply_weight else None
        b_ref = next(it)
        o_ref = next(it)
        sum_ref = next(it) if emit_mean else None
        acc_ref = next(it) if n_k_tiles > 1 else None

        # Grid indices: computed ONCE here, never inside pl.when bodies.
        i = pl.program_id(0)
        row0 = i * tm
        is_last_row = i == n_row_tiles - 1

        def load_x(k):
            if x_resident and n_k_tiles > 1:
                # X is fully resident in VMEM; slice the k-th source-node chunk.
                return x_ref[pl.ds(k * tk, tk), :]
            return x_ref[...]

        def epilogue(acc):
            if apply_weight:
                z = jnp.dot(acc, wt_ref[...],
                            preferred_element_type=jnp.float32) + b_ref[...]
            else:
                z = acc + b_ref[...]
            y = jnp.maximum(z, 0.0)
            o_ref[...] = y.astype(o_ref.dtype)
            if emit_mean:
                def col_sum(v):
                    return jnp.sum(v, axis=0, keepdims=True)[None]
                if mask_rows:
                    # Only the final row tile contains padded rows.
                    @pl.when(is_last_row)
                    def _masked():
                        rows = (jax.lax.broadcasted_iota(jnp.int32, y.shape, 0)
                                + row0)
                        sum_ref[...] = col_sum(jnp.where(rows < n_nodes, y, 0.0))

                    @pl.when(i != n_row_tiles - 1)
                    def _full():
                        sum_ref[...] = col_sum(y)
                else:
                    sum_ref[...] = col_sum(y)

        if n_k_tiles == 1:
            # Single reduction step: no scratch accumulator needed.
            epilogue(jnp.dot(a_ref[...], load_x(0),
                             preferred_element_type=jnp.float32))
        else:
            k = pl.program_id(1)

            @pl.when(k == 0)
            def _init():
                acc_ref[...] = jnp.zeros_like(acc_ref)

            acc_ref[...] += jnp.dot(a_ref[...], load_x(k),
                                    preferred_element_type=jnp.float32)

            @pl.when(k == n_k_tiles - 1)
            def _fin():
                epilogue(acc_ref[...])

    return kernel


def gcn_layer(adj, feat, weight, bias, last=False, *, tile=512,
              compute_dtype=jnp.float32, resident_x=None):
    """adj: [N, N], feat: [N, in], weight: [out, in] (torch layout), bias: [out].

    tile          : row / reduction tile for the N x N adjacency (multiple of 128).
    compute_dtype : dtype of the A @ X operands.  jnp.bfloat16 halves HBM traffic for
                    the bandwidth-bound adjacency and is MXU-native on v5e/v6e/v7x;
                    accumulation is always f32.  Default f32 matches the torch module.
    resident_x    : None=auto (VMEM budget), or force True/False.
    """
    n, in_feats = feat.shape
    out_feats = weight.shape[0]

    in_pad = _round_up(in_feats, 128)
    out_pad = _round_up(out_feats, 128)
    tile = max(128, _round_up(tile, 128))

    # --- tile / padding selection --------------------------------------------
    n128 = _round_up(n, 128)
    tk = min(tile, n128)
    n_kpad = _round_up(n, tk)
    if n128 <= tile:
        # Ensure >= 2 row tiles when possible so the "parallel" row axis actually
        # shards across both v7x TensorCores.
        tm = n128 if n128 < 256 else _round_up((n128 + 1) // 2, 128)
    else:
        tm = tile
    n_rpad = _round_up(n, tm)
    n_row_tiles = n_rpad // tm
    n_k_tiles = n_kpad // tk
    mask_rows = (n != n_rpad)

    sz = jnp.dtype(compute_dtype).itemsize

    # --- operand prep (single cast+pad pass, skipped when aligned) ------------
    adj_p = _prep(adj, n_rpad, n_kpad, compute_dtype)
    b_p = bias.astype(jnp.float32)
    if out_pad != out_feats:
        b_p = jnp.pad(b_p, (0, out_pad - out_feats))
    b_p = b_p.reshape(1, out_pad)

    apply_weight = in_pad <= out_pad
    if apply_weight:
        # Path A: (A @ H) @ W^T  -- the O(N^2) matmul carries in_pad lanes.
        x_p = _prep(feat, n_kpad, in_pad, compute_dtype)
        x_dim = in_pad
        wt_p = _prep(weight.T, in_pad, out_pad, jnp.float32)   # epilogue stays f32
    else:
        # Path B: A @ (H @ W^T) -- precompute HW so the O(N^2) matmul carries
        # out_pad lanes; W^T is NOT passed to the aggregation kernel.
        feat_p = _prep(feat, n_kpad, in_pad, compute_dtype)
        wt_c = _prep(weight.T, in_pad, out_pad, compute_dtype)
        lin_vmem = 2 * (tk * in_pad + in_pad * out_pad + tk * out_pad) * sz
        x_p = pl.pallas_call(
            _linear_kernel,
            out_shape=jax.ShapeDtypeStruct((n_kpad, out_pad), compute_dtype),
            grid=(n_kpad // tk,),
            in_specs=[
                pl.BlockSpec((tk, in_pad), lambda i: (i, 0)),
                pl.BlockSpec((in_pad, out_pad), lambda i: (0, 0)),
            ],
            out_specs=pl.BlockSpec((tk, out_pad), lambda i: (i, 0)),
            compiler_params=pltpu.CompilerParams(
                dimension_semantics=("parallel",),
                vmem_limit_bytes=min(_VMEM_CAP_BYTES,
                                     max(32 << 20, int(1.25 * lin_vmem)))),
            cost_estimate=pl.CostEstimate(
                flops=2 * n_kpad * in_pad * out_pad,
                transcendentals=0,
                bytes_accessed=(n_kpad * in_pad + in_pad * out_pad
                                + n_kpad * out_pad) * sz),
        )(feat_p, wt_c)
        x_dim = out_pad
        wt_p = None

    # --- VMEM budget: resident-X decision + explicit vmem limit ---------------
    def vmem_bytes(resident):
        b = 2 * tm * tk * sz                                       # A tile (2 bufs)
        b += (2 * n_kpad * x_dim if resident else 2 * tk * x_dim) * sz
        if n_k_tiles > 1:
            b += tm * x_dim * 4                                    # f32 accumulator
        if apply_weight:
            b += 2 * in_pad * out_pad * 4                          # resident W^T
        b += 2 * out_pad * 4                                       # bias
        b += 2 * tm * out_pad * 4                                  # output tile
        if last:
            b += 2 * out_pad * 4                                   # per-tile sums
        return b

    if resident_x is None:
        resident_x = vmem_bytes(True) <= int(0.8 * _VMEM_CAP_BYTES)
    vmem_limit = min(_VMEM_CAP_BYTES,
                     max(32 << 20, int(1.25 * vmem_bytes(resident_x))))

    # --- main aggregation kernel ----------------------------------------------
    kernel = _make_agg_kernel(
        n_nodes=n, tm=tm, tk=tk, n_row_tiles=n_row_tiles, n_k_tiles=n_k_tiles,
        apply_weight=apply_weight, emit_mean=last, x_resident=resident_x,
        mask_rows=mask_rows)

    in_specs = [pl.BlockSpec((tm, tk), lambda i, k: (i, k))]              # A tile
    operands = [adj_p, x_p]
    if resident_x:
        in_specs.append(pl.BlockSpec((n_kpad, x_dim), lambda i, k: (0, 0)))   # X resident
    else:
        in_specs.append(pl.BlockSpec((tk, x_dim), lambda i, k: (k, 0)))       # X streamed
    if apply_weight:
        in_specs.append(pl.BlockSpec((in_pad, out_pad), lambda i, k: (0, 0)))  # W^T resident
        operands.append(wt_p)
    in_specs.append(pl.BlockSpec((1, out_pad), lambda i, k: (0, 0)))           # bias
    operands.append(b_p)

    o_shape = jax.ShapeDtypeStruct((n_rpad, out_pad), jnp.float32)
    o_spec = pl.BlockSpec((tm, out_pad), lambda i, k: (i, 0))
    if last:
        out_shape = (o_shape,
                     jax.ShapeDtypeStruct((n_row_tiles, 1, out_pad), jnp.float32))
        out_specs = (o_spec, pl.BlockSpec((1, 1, out_pad), lambda i, k: (i, 0, 0)))
    else:
        out_shape = o_shape
        out_specs = o_spec

    flops = 2 * n_rpad * n_kpad * x_dim
    if apply_weight:
        flops += 2 * n_rpad * in_pad * out_pad
    bytes_accessed = (n_rpad * n_kpad * sz + n_kpad * x_dim * sz
                      + (in_pad * out_pad * 4 if apply_weight else 0)
                      + out_pad * 4 + n_rpad * out_pad * 4)

    result = pl.pallas_call(
        kernel,
        out_shape=out_shape,
        grid=(n_row_tiles, n_k_tiles),
        in_specs=in_specs,
        out_specs=out_specs,
        scratch_shapes=([pltpu.VMEM((tm, x_dim), jnp.float32)]
                        if n_k_tiles > 1 else []),
        compiler_params=pltpu.CompilerParams(
            dimension_semantics=("parallel", "arbitrary"),
            vmem_limit_bytes=vmem_limit),
        cost_estimate=pl.CostEstimate(flops=flops, transcendentals=0,
                                      bytes_accessed=bytes_accessed),
    )(*operands)

    if last:
        h_pad, tile_sums = result
    else:
        h_pad = result
    h_out = h_pad[:n, :out_feats]
    if last:
        # dgl.mean_nodes for a single (unbatched) graph == mean over the node axis.
        # TODO(synk): batched-graph segment-mean (dgl batching) not implemented.
        col_sums = tile_sums.reshape(n_row_tiles, out_pad).sum(axis=0)[:out_feats]
        mean = (col_sums / n).reshape(1, out_feats)
        return mean, h_out
    return h_out


def _reference(adj, feat, weight, bias):
    hi = jax.lax.Precision.HIGHEST
    agg = jnp.dot(adj, feat, precision=hi)
    z = jnp.dot(agg, weight.T, precision=hi) + bias
    return jnp.maximum(z, 0.0)


def _make_inputs(key, n, in_feats, out_feats):
    k_adj, k_feat, k_w, k_b = jax.random.split(key, 4)
    adj = jax.random.uniform(k_adj, (n, n), dtype=jnp.float32)
    feat = jax.random.normal(k_feat, (n, in_feats), dtype=jnp.float32)
    bound = 1.0 / (in_feats ** 0.5)
    weight = jax.random.uniform(k_w, (out_feats, in_feats), dtype=jnp.float32,
                                minval=-bound, maxval=bound)
    bias = jax.random.uniform(k_b, (out_feats,), dtype=jnp.float32,
                              minval=-bound, maxval=bound)
    return adj, feat, weight, bias


if __name__ == "__main__":
    key = jax.random.PRNGKey(0)
    k1, k2, k3 = jax.random.split(key, 3)

    # 1) Small case (path A: out >= in), single row/k tile.
    N, IN, OUT = 16, 8, 32
    adj, feat, weight, bias = _make_inputs(k1, N, IN, OUT)
    out = jax.block_until_ready(gcn_layer(adj, feat, weight, bias, last=False))
    ref = _reference(adj, feat, weight, bias)
    assert out.shape == (N, OUT)
    assert jnp.allclose(out, ref, atol=3e-3, rtol=3e-3), "test1"

    # 2) Multi row/k-tile grid (N not a tile multiple), fused mean readout,
    #    X kept VMEM-resident (auto).
    N2, IN2, OUT2 = 300, 8, 32
    adj2, feat2, weight2, bias2 = _make_inputs(k2, N2, IN2, OUT2)
    mean2, h2 = gcn_layer(adj2, feat2, weight2, bias2, last=True, tile=128)
    mean2, h2 = jax.block_until_ready((mean2, h2))
    ref2 = _reference(adj2, feat2, weight2, bias2)
    assert h2.shape == (N2, OUT2) and mean2.shape == (1, OUT2)
    assert jnp.allclose(h2, ref2, atol=5e-3, rtol=5e-3), "test2 h"
    assert jnp.allclose(mean2, jnp.mean(ref2, axis=0, keepdims=True),
                        atol=5e-3, rtol=5e-3), "test2 mean"

    # 2b) Same problem, streamed-X pipeline with accumulator scratch (forced).
    h2b = jax.block_until_ready(
        gcn_layer(adj2, feat2, weight2, bias2, last=False, tile=128,
                  resident_x=False))
    assert jnp.allclose(h2b, ref2, atol=5e-3, rtol=5e-3), "test2b"

    # 2c) Default tile: exercises the >=2-row-tile split (v7x megacore) with a
    #     single reduction step (no scratch accumulator).
    h2c = jax.block_until_ready(gcn_layer(adj2, feat2, weight2, bias2, last=False))
    assert jnp.allclose(h2c, ref2, atol=5e-3, rtol=5e-3), "test2c"

    # 3) in_feats > out_feats -> path B (HW = H @ W^T pre-kernel; aggregation
    #    kernel does not stream W^T).
    N3, IN3, OUT3 = 16, 256, 32
    adj3, feat3, weight3, bias3 = _make_inputs(k3, N3, IN3, OUT3)
    out3 = jax.block_until_ready(gcn_layer(adj3, feat3, weight3, bias3, last=False))
    ref3 = _reference(adj3, feat3, weight3, bias3)
    assert out3.shape == (N3, OUT3)
    assert jnp.allclose(out3, ref3, atol=5e-3, rtol=5e-3), "test3"

    # 4) bf16 compute path for the O(N^2) matmul (recommended on v5e/v6e/v7x: ~2x
    #    HBM traffic reduction on the adjacency).  Validate against an f32
    #    reference with bf16-rounded inputs, and sanity-bound vs the exact f32 ref.
    out_bf16 = jax.block_until_ready(
        gcn_layer(adj2, feat2, weight2, bias2, last=False,
                  compute_dtype=jnp.bfloat16))
    adj2_r = adj2.astype(jnp.bfloat16).astype(jnp.float32)
    feat2_r = feat2.astype(jnp.bfloat16).astype(jnp.float32)
    ref_bf16 = _reference(adj2_r, feat2_r, weight2, bias2)
    assert out_bf16.shape == (N2, OUT2)
    assert jnp.allclose(out_bf16, ref_bf16, atol=5e-2, rtol=2e-2), "test4 (bf16)"
    assert jnp.allclose(out_bf16, ref2, atol=0.5, rtol=0.1), "test4 vs f32"

    print("KERNEL_OK")
</pallas_src>

<mosaic_0001>
module attributes {stable_mosaic.version = 11 : i64} {
  func.func @kernel(%arg0: i32, %arg1: i32, %arg2: memref<128x128xf32, #tpu.memory_space<vmem>>, %arg3: memref<128x128xf32, #tpu.memory_space<vmem>>, %arg4: memref<128x128xf32, #tpu.memory_space<vmem>>, %arg5: memref<1x128xf32, #tpu.memory_space<vmem>>, %arg6: memref<128x128xf32, #tpu.memory_space<vmem>>) attributes {dimension_semantics = [#tpu.dimension_semantics<parallel>, #tpu.dimension_semantics<arbitrary>], iteration_bounds = array<i64: 1, 1>, scalar_prefetch = 0 : i64, scratch_operands = 0 : i64, tpu.core_type = #tpu.core_type<tc>, window_params = [{transform_indices = @transform_0, window_bounds = array<i64: 128, 128>}, {pipeline_mode = #tpu.pipeline_mode<synchronous>, transform_indices = @transform_1, window_bounds = array<i64: 128, 128>}, {pipeline_mode = #tpu.pipeline_mode<synchronous>, transform_indices = @transform_2, window_bounds = array<i64: 128, 128>}, {pipeline_mode = #tpu.pipeline_mode<synchronous>, transform_indices = @transform_3, window_bounds = array<i64: 1, 128>}, {transform_indices = @transform_4, window_bounds = array<i64: 128, 128>}]} {
    %c0 = arith.constant 0 : index
    %c0_0 = arith.constant 0 : index
    %0 = vector.load %arg2[%c0, %c0_0] : memref<128x128xf32, #tpu.memory_space<vmem>>, vector<128x128xf32>
    %c0_1 = arith.constant 0 : index
    %c0_2 = arith.constant 0 : index
    %1 = vector.load %arg3[%c0_1, %c0_2] : memref<128x128xf32, #tpu.memory_space<vmem>>, vector<128x128xf32>
    %cst = arith.constant dense<0.000000e+00> : vector<128x128xf32>
    %2 = tpu.matmul %0, %1, %cst {dimension_numbers = #tpu.dot_dimension_numbers<[1], [0], [0], [1], [0, 0, 1, 1], [], []>} : vector<128x128xf32>, vector<128x128xf32>, vector<128x128xf32> -> vector<128x128xf32>
    %c0_3 = arith.constant 0 : index
    %c0_4 = arith.constant 0 : index
    %3 = vector.load %arg4[%c0_3, %c0_4] : memref<128x128xf32, #tpu.memory_space<vmem>>, vector<128x128xf32>
    %cst_5 = arith.constant dense<0.000000e+00> : vector<128x128xf32>
    %4 = tpu.matmul %2, %3, %cst_5 {dimension_numbers = #tpu.dot_dimension_numbers<[1], [0], [0], [1], [0, 0, 1, 1], [], []>} : vector<128x128xf32>, vector<128x128xf32>, vector<128x128xf32> -> vector<128x128xf32>
    %c0_6 = arith.constant 0 : index
    %c0_7 = arith.constant 0 : index
    %5 = vector.load %arg5[%c0_6, %c0_7] : memref<1x128xf32, #tpu.memory_space<vmem>>, vector<1x128xf32>
    %6 = vector.broadcast %5 : vector<1x128xf32> to vector<128x128xf32>
    %7 = arith.addf %4, %6 : vector<128x128xf32>
    %cst_8 = arith.constant 0.000000e+00 : f32
    %8 = vector.broadcast %cst_8 : f32 to vector<128x128xf32>
    %9 = arith.maximumf %7, %8 : vector<128x128xf32>
    %c0_9 = arith.constant 0 : index
    %c0_10 = arith.constant 0 : index
    %10 = vector.load %arg6[%c0_9, %c0_10] : memref<128x128xf32, #tpu.memory_space<vmem>>, vector<128x128xf32>
    tpu.vector_store %arg6[%c0_9, %c0_10], %9 {strides = array<i32>} : memref<128x128xf32, #tpu.memory_space<vmem>>, vector<128x128xf32>,
    return
  }
  func.func @transform_0(%arg0: i32, %arg1: i32) -> (i32, i32) {
    %c0_i32 = arith.constant 0 : i32
    return %arg0, %arg1 : i32, i32
  }
  func.func @transform_1(%arg0: i32, %arg1: i32) -> (i32, i32) {
    %c0_i32 = arith.constant 0 : i32
    %c0_i32_0 = arith.constant 0 : i32
    %c0_i32_1 = arith.constant 0 : i32
    return %c0_i32, %c0_i32_0 : i32, i32
  }
  func.func @transform_2(%arg0: i32, %arg1: i32) -> (i32, i32) {
    %c0_i32 = arith.constant 0 : i32
    %c0_i32_0 = arith.constant 0 : i32
    %c0_i32_1 = arith.constant 0 : i32
    return %c0_i32, %c0_i32_0 : i32, i32
  }
  func.func @transform_3(%arg0: i32, %arg1: i32) -> (i32, i32) {
    %c0_i32 = arith.constant 0 : i32
    %c0_i32_0 = arith.constant 0 : i32
    %c0_i32_1 = arith.constant 0 : i32
    return %c0_i32, %c0_i32_0 : i32, i32
  }
  func.func @transform_4(%arg0: i32, %arg1: i32) -> (i32, i32) {
    %c0_i32 = arith.constant 0 : i32
    %c0_i32_0 = arith.constant 0 : i32
    return %arg0, %c0_i32 : i32, i32
  }
}

</mosaic_0001>

<bundles_post_ra>
// kernel: tpu_custom_call.1
= control target key start
LH: loop header
LB: loop body
LE: loop exit
PB: predicated region body
PF: predicated region fallthrough
CT: control target
= control target key end

     0   :  { %9 = vsyncpa [#allocation3], 0  ;;  %s896_s0 = inlined_call_operand.hbm [shape: f32[128,128], index: 0, kind: input, shape index: {}]   ;;  %s897_s1 = inlined_call_operand.hbm [shape: f32[128,128], index: 1, kind: input, shape index: {}]   ;;  %s898_s2 = inlined_call_operand.hbm [shape: f32[128,128], index: 2, kind: input, shape index: {}]   ;;  %s899_s3 = inlined_call_operand.vmem [shape: f32[1,128], index: 3, kind: input, shape index: {}]   ;;  %s900_s4 = inlined_call_operand.hbm [shape: f32[128,128], index: 4, kind: output, shape index: {}]  }
   0x1   :  { %10 = vsyncpa [#allocation6], 0 }
   0x2   :  { %11 = vsyncpa [#allocation4], 0  ;;  %s795_s15 = smov [#allocation5]   ;;  %s796_s17 = smov [#allocation2]  }
   0x3   :  { %s29_s16 = sshll.u32 %s795_s15, 4  ;;  %s17_s18 = sshll.u32 %s796_s17, 4  ;;  %s30_s16 = int_to_ptr.vmem [resolvable:$true] %s29_s16  ;;  %s826_s18 = int_to_ptr.vmem [resolvable:$true] %s17_s18 }
   0x4   :  { %s701_s21 = scalar_lea.hbm %s897_s1, 2048 }
   0x5   :  { %p702_p0 = scmp.ne.s32.totalorder %s897_s1, %s701_s21  ;;  %p705_p1 = scmp.lt.u32.totalorder %s701_s21, %s897_s1 }
   0x7   :  { %p707_p2 = pnand %p705_p1, %p702_p0 }
   0x9   :  { %710 = shalt.err (!%p707_p2)
}
   0xa   :  { %s711_s26 = scalar_lea.vmem %s30_s16, 2048  ;;  %p716_p4 = scmp.lt.s32.totalorder %s30_s16, %s30_s16 }
   0xb   :  { %p712_p3 = scmp.ne.s32.totalorder %s30_s16, %s711_s26  ;;  %p717_p5 = scmp.lt.s32.totalorder %s711_s26, %s711_s26 }
   0xd   :  { %p718_p6 = por %p717_p5, %p716_p4 }
   0xf   :  { %p719_p7 = pnand %p718_p6, %p712_p3 }
  0x11   :  { %722 = shalt.err (!%p719_p7)
}
  0x12   :  { %s797_s27 = smov 128   ;;  %s798_s28 = smov 8  }
  0x13   :  { %35 = dma.hbm_to_vmem [thread:$0]  %s897_s1, 2048, %s30_s16, [#allocation6], %s797_s27, %s797_s27, %s798_s28  }
  0x14   :  { %s723_s7 = scalar_lea.hbm %s896_s0, 2048 }
  0x15   :  { %p724_p8 = scmp.ne.s32.totalorder %s896_s0, %s723_s7  ;;  %p727_p9 = scmp.lt.u32.totalorder %s723_s7, %s896_s0 }
  0x17   :  { %p729_p10 = pnand %p727_p9, %p724_p8 }
  0x19   :  { %732 = shalt.err (!%p729_p10)
}
  0x1a   :  { %s733_s12 = scalar_lea.vmem %s826_s18, 2048  ;;  %p738_p12 = scmp.lt.s32.totalorder %s826_s18, %s826_s18 }
  0x1b   :  { %p734_p11 = scmp.ne.s32.totalorder %s826_s18, %s733_s12  ;;  %p739_p13 = scmp.lt.s32.totalorder %s733_s12, %s733_s12 }
  0x1d   :  { %p740_p0 = por %p739_p13, %p738_p12 }
  0x1f   :  { %p741_p1 = pnand %p740_p0, %p734_p11 }
  0x21   :  { %744 = shalt.err (!%p741_p1)
}
  0x22   :  { %23 = dma.hbm_to_vmem [thread:$0]  %s896_s0, 2048, %s826_s18, [#allocation3], %s797_s27, %s797_s27, %s798_s28  }
  0x23   :  { %s799_s14 = smov [#allocation7]   ;;  %s745_s19 = scalar_lea.hbm %s898_s2, 2048 }
  0x24   :  { %s41_s15 = sshll.u32 %s799_s14, 4  ;;  %p746_p2 = scmp.ne.s32.totalorder %s898_s2, %s745_s19  ;;  %s42_s15 = int_to_ptr.vmem [resolvable:$true] %s41_s15 }
  0x25   :  { %p749_p3 = scmp.lt.u32.totalorder %s745_s19, %s898_s2 }
  0x27   :  { %p751_p4 = pnand %p749_p3, %p746_p2 }
  0x29   :  { %754 = shalt.err (!%p751_p4)
}
  0x2a   :  { %s755_s24 = scalar_lea.vmem %s42_s15, 2048  ;;  %p760_p6 = scmp.lt.s32.totalorder %s42_s15, %s42_s15 }
  0x2b   :  { %p756_p5 = scmp.ne.s32.totalorder %s42_s15, %s755_s24  ;;  %p761_p7 = scmp.lt.s32.totalorder %s755_s24, %s755_s24 }
  0x2d   :  { %p762_p8 = por %p761_p7, %p760_p6 }
  0x2f   :  { %p763_p9 = pnand %p762_p8, %p756_p5 }
  0x31   :  { %766 = shalt.err (!%p763_p9)
}
  0x32   :  { %47 = dma.hbm_to_vmem [thread:$0]  %s898_s2, 2048, %s42_s15, [#allocation6], %s797_s27, %s797_s27, %s798_s28  }
  0x33   :  { %789 = dma.done.wait [#allocation3], 2048  }
  0x34   :  { %790 = vsyncadd [#allocation3], 4294965248 }
  0x35   :  { %791 = dma.done.wait [#allocation6], 4096  }
  0x36   :  { %792 = vsyncadd [#allocation6], 4294963200  ;;  %v75_v0 = vld [vmem:[#allocation5] sm:$0xff]  ;;  %v76_v1 = vld [vmem:[#allocation5 + $0x8] sm:$0xff] }
  0x37   :  { %v77_v2 = vld [vmem:[#allocation5 + $0x10] sm:$0xff]  ;;  %v631_v3 = vpack.c.bf16 %v76_v1, %v75_v0  ;;  %v78_v4 = vld [vmem:[#allocation5 + $0x18] sm:$0xff]  ;;  %v79_v6 = vld [vmem:[#allocation5 + $0x20] sm:$0xff] }
  0x38   :  { %v635_v5 = vpack.c.bf16 %v78_v4, %v77_v2  ;;  %v80_v7 = vld [vmem:[#allocation5 + $0x28] sm:$0xff]  ;;  %v59_v9 = vld [vmem:[#allocation2] sm:$0xff]  ;;  %v81_v10 = vld [vmem:[#allocation5 + $0x30] sm:$0xff] }
  0x39   :  { %632 = vmatprep.subr.bf16.mxu0 %v631_v3  ;;  %v639_v8 = vpack.c.bf16 %v80_v7, %v79_v6  ;;  %v82_v11 = vld [vmem:[#allocation5 + $0x38] sm:$0xff]  ;;  %551 = vmatprep.mubr.f32.mxu0 %v59_v9  ;;  %v83_v13 = vld [vmem:[#allocation5 + $0x40] sm:$0xff]  ;;  %v84_v14 = vld [vmem:[#allocation5 + $0x48] sm:$0xff] }
  0x3a   :  { %634 = vmatpush3.bf16.msra.mxu0 %v631_v3  ;;  %v643_v12 = vpack.c.bf16 %v82_v11, %v81_v10  ;;  %v236_v15 = vld [vmem:[#allocation7] sm:$0xff]  ;;  %v237_v16 = vld [vmem:[#allocation7 + $0x8] sm:$0xff]  ;;  %v238_v17 = vld [vmem:[#allocation7 + $0x10] sm:$0xff]  ;;  %v647_v21 = vpack.c.bf16 %v84_v14, %v83_v13 }
  0x3b   :  { %636 = vmatprep.subr.bf16.mxu0 %v635_v5  ;;  %v239_v18 = vld [vmem:[#allocation7 + $0x18] sm:$0xff]  ;;  %v663_v19 = vpack.c.bf16 %v237_v16, %v236_v15  ;;  %v240_v22 = vld [vmem:[#allocation7 + $0x20] sm:$0xff]  ;;  %v241_v23 = vld [vmem:[#allocation7 + $0x28] sm:$0xff] }
  0x3c   :  { %v667_v20 = vpack.c.bf16 %v239_v18, %v238_v17  ;;  %v85_v24 = vld [vmem:[#allocation5 + $0x50] sm:$0xff]  ;;  %v86_v25 = vld [vmem:[#allocation5 + $0x58] sm:$0xff]  ;;  %v671_v26 = vpack.c.bf16 %v241_v23, %v240_v22  ;;  %v87_v30 = vld [vmem:[#allocation5 + $0x60] sm:$0xff] }
  0x3d   :  { %664 = vmatprep.subr.bf16.mxu1 %v663_v19  ;;  %v651_v27 = vpack.c.bf16 %v86_v25, %v85_v24  ;;  %v242_v28 = vld [vmem:[#allocation7 + $0x30] sm:$0xff]  ;;  %v243_v29 = vld [vmem:[#allocation7 + $0x38] sm:$0xff]  ;;  %v88_v31 = vld [vmem:[#allocation5 + $0x68] sm:$0xff] }
  0x3e   :  { %638 = vmatpush3.bf16.msra.mxu0 %v635_v5  ;;  %666 = vmatpush3.bf16.msra.mxu1 %v663_v19  ;;  %v675_v32 = vpack.c.bf16 %v243_v29, %v242_v28  ;;  %v655_v33 = vpack.c.bf16 %v88_v31, %v87_v30  ;;  %v244_v34 = vld [vmem:[#allocation7 + $0x40] sm:$0xff]  ;;  %v245_v35 = vld [vmem:[#allocation7 + $0x48] sm:$0xff]  ;;  %v89_v36 = vld [vmem:[#allocation5 + $0x70] sm:$0xff] }
  0x3f   :  { %640 = vmatprep.subr.bf16.mxu0 %v639_v8  ;;  %668 = vmatprep.subr.bf16.mxu1 %v667_v20  ;;  %v90_v37 = vld [vmem:[#allocation5 + $0x78] sm:$0xff]  ;;  %v679_v38 = vpack.c.bf16 %v245_v35, %v244_v34  ;;  %v246_v40 = vld [vmem:[#allocation7 + $0x50] sm:$0xff]  ;;  %v248_v43 = vld [vmem:[#allocation7 + $0x60] sm:$0xff] }
  0x40   :  { %v659_v39 = vpack.c.bf16 %v90_v37, %v89_v36  ;;  %v247_v41 = vld [vmem:[#allocation7 + $0x58] sm:$0xff]  ;;  %v249_v44 = vld [vmem:[#allocation7 + $0x68] sm:$0xff]  ;;  %v61_v47 = vld [vmem:[#allocation2 + $0x10] sm:$0xff] }
  0x41   :  { %v683_v42 = vpack.c.bf16 %v247_v41, %v246_v40  ;;  %v60_v45 = vld [vmem:[#allocation2 + $0x8] sm:$0xff]  ;;  %v687_v46 = vpack.c.bf16 %v249_v44, %v248_v43  ;;  %v250_v48 = vld [vmem:[#allocation7 + $0x70] sm:$0xff]  ;;  %v251_v49 = vld [vmem:[#allocation7 + $0x78] sm:$0xff] }
  0x42   :  { %642 = vmatpush3.bf16.msra.mxu0 %v639_v8  ;;  %670 = vmatpush3.bf16.msra.mxu1 %v667_v20  ;;  %v62_v50 = vld [vmem:[#allocation2 + $0x18] sm:$0xff]  ;;  %v691_v51 = vpack.c.bf16 %v251_v49, %v250_v48  ;;  %v63_v52 = vld [vmem:[#allocation2 + $0x20] sm:$0xff]  ;;  %v64_v53 = vld [vmem:[#allocation2 + $0x28] sm:$0xff] }
  0x43   :  { %644 = vmatprep.subr.bf16.mxu0 %v643_v12  ;;  %672 = vmatprep.subr.bf16.mxu1 %v671_v26  ;;  %v65_v54 = vld [vmem:[#allocation2 + $0x30] sm:$0xff]  ;;  %v66_v55 = vld [vmem:[#allocation2 + $0x38] sm:$0xff]  ;;  %v67_v56 = vld [vmem:[#allocation2 + $0x40] sm:$0xff] }
  0x44   :  { %v68_v57 = vld [vmem:[#allocation2 + $0x48] sm:$0xff]  ;;  %v69_v58 = vld [vmem:[#allocation2 + $0x50] sm:$0xff]  ;;  %v70_v59 = vld [vmem:[#allocation2 + $0x58] sm:$0xff] }
  0x45   :  { %v71_v60 = vld [vmem:[#allocation2 + $0x60] sm:$0xff]  ;;  %v72_v61 = vld [vmem:[#allocation2 + $0x68] sm:$0xff]  ;;  %v73_v62 = vld [vmem:[#allocation2 + $0x70] sm:$0xff] }
  0x46   :  { %646 = vmatpush3.bf16.msra.mxu0 %v643_v12  ;;  %674 = vmatpush3.bf16.msra.mxu1 %v671_v26  ;;  %v74_v63 = vld [vmem:[#allocation2 + $0x78] sm:$0xff]  ;;  %v454_v16 = vld [vmem:[%s899_s3] ss:$0 sm:$0xff]  ;;  %s800_s3 = smov [#allocation8]  }
  0x47   :  { %648 = vmatprep.subr.bf16.mxu0 %v647_v21  ;;  %676 = vmatprep.subr.bf16.mxu1 %v675_v32  ;;  %s441_s26 = sshll.u32 %s800_s3, 4  ;;  %s442_s26 = int_to_ptr.vmem [resolvable:$true] %s441_s26 }
  0x48   :  { %s767_s29 = scalar_lea.vmem %s442_s26, 2048  ;;  %p772_p11 = scmp.lt.s32.totalorder %s442_s26, %s442_s26 }
  0x49   :  { %p768_p10 = scmp.ne.s32.totalorder %s442_s26, %s767_s29  ;;  %p773_p12 = scmp.lt.s32.totalorder %s767_s29, %s767_s29 }
  0x4a   :  { %650 = vmatpush3.bf16.msra.mxu0 %v647_v21  ;;  %678 = vmatpush3.bf16.msra.mxu1 %v675_v32 }
  0x4b   :  { %652 = vmatprep.subr.bf16.mxu0 %v651_v27  ;;  %680 = vmatprep.subr.bf16.mxu1 %v679_v38  ;;  %p774_p13 = por %p773_p12, %p772_p11 }
  0x4d   :  { %p775_p0 = pnand %p774_p13, %p768_p10 }
  0x4e   :  { %654 = vmatpush3.bf16.msra.mxu0 %v651_v27  ;;  %682 = vmatpush3.bf16.msra.mxu1 %v679_v38 }
  0x4f   :  { %656 = vmatprep.subr.bf16.mxu0 %v655_v33  ;;  %684 = vmatprep.subr.bf16.mxu1 %v683_v42 }
  0x52   :  { %658 = vmatpush3.bf16.msra.mxu0 %v655_v33  ;;  %686 = vmatpush3.bf16.msra.mxu1 %v683_v42 }
  0x53   :  { %660 = vmatprep.subr.bf16.mxu0 %v659_v39  ;;  %688 = vmatprep.subr.bf16.mxu1 %v687_v46 }
  0x56   :  { %662 = vmatpush3.bf16.msra.mxu0 %v659_v39  ;;  %690 = vmatpush3.bf16.msra.mxu1 %v687_v46 }
  0x57   :  { %692 = vmatprep.subr.bf16.mxu1 %v691_v51 }
  0x59   :  { %552 = vmatmul.mubr.f32.vlgmr.msra.gmra.mrb[0].mxu0 %v60_v45 }
  0x5a   :  { %554 = vmatprep.mubr.f32.mxu0 %v61_v47  ;;  %694 = vmatpush3.bf16.msra.mxu1 %v691_v51 }
  0x5d   :  { %555 = vmatmul.mubr.f32.gmra.mrb[2].mxu0 %v62_v50 }
  0x5e   :  { %557 = vmatprep.mubr.f32.mxu0 %v63_v52 }
  0x61   :  { %558 = vmatmul.mubr.f32.gmra.mrb[4].mxu0 %v64_v53 }
  0x62   :  { %560 = vmatprep.mubr.f32.mxu0 %v65_v54 }
  0x65   :  { %561 = vmatmul.mubr.f32.gmra.mrb[6].mxu0 %v66_v55 }
  0x66   :  { %563 = vmatprep.mubr.f32.mxu0 %v67_v56 }
  0x69   :  { %564 = vmatmul.mubr.f32.gmra.mrb[8].mxu0 %v68_v57 }
  0x6a   :  { %566 = vmatprep.mubr.f32.mxu0 %v69_v58 }
  0x6d   :  { %567 = vmatmul.mubr.f32.gmra.mrb[10].mxu0 %v70_v59 }
  0x6e   :  { %569 = vmatprep.mubr.f32.mxu0 %v71_v60 }
  0x71   :  { %570 = vmatmul.mubr.f32.gmra.mrb[12].mxu0 %v72_v61 }
  0x72   :  { %572 = vmatprep.mubr.f32.mxu0 %v73_v62 }
  0x75   :  { %573 = vmatmul.mubr.f32.gmra.mrb[14].mxu0 %v74_v63 }
 0x12c   :  { %v553_v0 = vpop.f32.mrb[0].mxu0 }
 0x12d   :  { %v157_v1 = vpop.f32.mrb[1].mxu0 }
 0x12e   :  { %607 = vmatprep.mubr.f32.mxu1 %v157_v1 }
 0x12f   :  { %608 = vmatmul.mubr.f32.vlgmr.msra.gmra.mrb[0].mxu1 %v553_v0 }
 0x130   :  { %v556_v2 = vpop.f32.mrb[2].mxu0 }
 0x131   :  { %v167_v3 = vpop.f32.mrb[3].mxu0 }
 0x132   :  { %610 = vmatprep.mubr.f32.mxu1 %v167_v3 }
 0x133   :  { %611 = vmatmul.mubr.f32.gmra.mrb[2].mxu1 %v556_v2 }
 0x134   :  { %v559_v4 = vpop.f32.mrb[4].mxu0 }
 0x135   :  { %v177_v5 = vpop.f32.mrb[5].mxu0 }
 0x136   :  { %613 = vmatprep.mubr.f32.mxu1 %v177_v5 }
 0x137   :  { %614 = vmatmul.mubr.f32.gmra.mrb[4].mxu1 %v559_v4 }
 0x138   :  { %v562_v6 = vpop.f32.mrb[6].mxu0 }
 0x139   :  { %v187_v7 = vpop.f32.mrb[7].mxu0 }
 0x13a   :  { %616 = vmatprep.mubr.f32.mxu1 %v187_v7 }
 0x13b   :  { %617 = vmatmul.mubr.f32.gmra.mrb[6].mxu1 %v562_v6 }
 0x13c   :  { %v565_v8 = vpop.f32.mrb[8].mxu0 }
 0x13d   :  { %v197_v9 = vpop.f32.mrb[9].mxu0 }
 0x13e   :  { %619 = vmatprep.mubr.f32.mxu1 %v197_v9 }
 0x13f   :  { %620 = vmatmul.mubr.f32.gmra.mrb[8].mxu1 %v565_v8 }
 0x140   :  { %v568_v10 = vpop.f32.mrb[10].mxu0 }
 0x141   :  { %v207_v11 = vpop.f32.mrb[11].mxu0 }
 0x142   :  { %622 = vmatprep.mubr.f32.mxu1 %v207_v11 }
 0x143   :  { %623 = vmatmul.mubr.f32.gmra.mrb[10].mxu1 %v568_v10 }
 0x144   :  { %v571_v12 = vpop.f32.mrb[12].mxu0 }
 0x145   :  { %v217_v13 = vpop.f32.mrb[13].mxu0 }
 0x146   :  { %625 = vmatprep.mubr.f32.mxu1 %v217_v13 }
 0x147   :  { %626 = vmatmul.mubr.f32.gmra.mrb[12].mxu1 %v571_v12 }
 0x148   :  { %v574_v14 = vpop.f32.mrb[14].mxu0 }
 0x149   :  { %v227_v15 = vpop.f32.mrb[15].mxu0 }
 0x14a   :  { %628 = vmatprep.mubr.f32.mxu1 %v227_v15 }
 0x14b   :  { %629 = vmatmul.mubr.f32.gmra.mrb[14].mxu1 %v574_v14 }
 0x202   :  { %v609_v17 = vpop.f32.mrb[0].mxu1 }
 0x203   :  { %v331_v18 = vadd.f32 %v609_v17, %v454_v16  ;;  %v325_v19 = vpop.f32.mrb[1].mxu1 }
 0x204   :  { %v326_v20 = vadd.f32 %v454_v16, %v325_v19 }
 0x205   :  { %v405_v21 = vmax.f32 %v331_v18, 0.0 }
 0x206   :  { %v404_v22 = vmax.f32 %v326_v20, 0.0  ;;  %v612_v23 = vpop.f32.mrb[2].mxu1 }
 0x207   :  { %421 = vst [vmem:[#allocation8 + $0x8] sm:$0xff] %v405_v21  ;;  %v341_v24 = vadd.f32 %v612_v23, %v454_v16  ;;  %v335_v25 = vpop.f32.mrb[3].mxu1 }
 0x208   :  { %420 = vst [vmem:[#allocation8] sm:$0xff] %v404_v22  ;;  %v336_v26 = vadd.f32 %v454_v16, %v335_v25 }
 0x209   :  { %v407_v27 = vmax.f32 %v341_v24, 0.0 }
 0x20a   :  { %v406_v28 = vmax.f32 %v336_v26, 0.0  ;;  %v615_v29 = vpop.f32.mrb[4].mxu1 }
 0x20b   :  { %423 = vst [vmem:[#allocation8 + $0x18] sm:$0xff] %v407_v27  ;;  %v351_v30 = vadd.f32 %v615_v29, %v454_v16  ;;  %v345_v31 = vpop.f32.mrb[5].mxu1 }
 0x20c   :  { %422 = vst [vmem:[#allocation8 + $0x10] sm:$0xff] %v406_v28  ;;  %v346_v32 = vadd.f32 %v454_v16, %v345_v31 }
 0x20d   :  { %v409_v33 = vmax.f32 %v351_v30, 0.0 }
 0x20e   :  { %v408_v34 = vmax.f32 %v346_v32, 0.0  ;;  %v618_v35 = vpop.f32.mrb[6].mxu1 }
 0x20f   :  { %425 = vst [vmem:[#allocation8 + $0x28] sm:$0xff] %v409_v33  ;;  %v361_v36 = vadd.f32 %v618_v35, %v454_v16  ;;  %v355_v37 = vpop.f32.mrb[7].mxu1 }
 0x210   :  { %424 = vst [vmem:[#allocation8 + $0x20] sm:$0xff] %v408_v34  ;;  %v356_v38 = vadd.f32 %v454_v16, %v355_v37 }
 0x211   :  { %v411_v39 = vmax.f32 %v361_v36, 0.0 }
 0x212   :  { %v410_v40 = vmax.f32 %v356_v38, 0.0  ;;  %v621_v41 = vpop.f32.mrb[8].mxu1 }
 0x213   :  { %427 = vst [vmem:[#allocation8 + $0x38] sm:$0xff] %v411_v39  ;;  %v371_v42 = vadd.f32 %v621_v41, %v454_v16  ;;  %v365_v43 = vpop.f32.mrb[9].mxu1 }
 0x214   :  { %426 = vst [vmem:[#allocation8 + $0x30] sm:$0xff] %v410_v40  ;;  %v366_v44 = vadd.f32 %v454_v16, %v365_v43 }
 0x215   :  { %v413_v45 = vmax.f32 %v371_v42, 0.0 }
 0x216   :  { %v412_v46 = vmax.f32 %v366_v44, 0.0  ;;  %v624_v47 = vpop.f32.mrb[10].mxu1 }
 0x217   :  { %429 = vst [vmem:[#allocation8 + $0x48] sm:$0xff] %v413_v45  ;;  %v381_v48 = vadd.f32 %v624_v47, %v454_v16  ;;  %v375_v49 = vpop.f32.mrb[11].mxu1 }
 0x218   :  { %428 = vst [vmem:[#allocation8 + $0x40] sm:$0xff] %v412_v46  ;;  %v376_v50 = vadd.f32 %v454_v16, %v375_v49 }
 0x219   :  { %v415_v51 = vmax.f32 %v381_v48, 0.0 }
 0x21a   :  { %v414_v52 = vmax.f32 %v376_v50, 0.0  ;;  %v627_v53 = vpop.f32.mrb[12].mxu1 }
 0x21b   :  { %431 = vst [vmem:[#allocation8 + $0x58] sm:$0xff] %v415_v51  ;;  %v391_v54 = vadd.f32 %v627_v53, %v454_v16  ;;  %v385_v55 = vpop.f32.mrb[13].mxu1 }
 0x21c   :  { %430 = vst [vmem:[#allocation8 + $0x50] sm:$0xff] %v414_v52  ;;  %v386_v56 = vadd.f32 %v454_v16, %v385_v55 }
 0x21d   :  { %v417_v57 = vmax.f32 %v391_v54, 0.0 }
 0x21e   :  { %v416_v58 = vmax.f32 %v386_v56, 0.0  ;;  %v630_v59 = vpop.f32.mrb[14].mxu1 }
 0x21f   :  { %433 = vst [vmem:[#allocation8 + $0x68] sm:$0xff] %v417_v57  ;;  %v401_v60 = vadd.f32 %v630_v59, %v454_v16  ;;  %v395_v61 = vpop.f32.mrb[15].mxu1 }
 0x220   :  { %432 = vst [vmem:[#allocation8 + $0x60] sm:$0xff] %v416_v58  ;;  %v396_v62 = vadd.f32 %v454_v16, %v395_v61 }
 0x221   :  { %v419_v63 = vmax.f32 %v401_v60, 0.0 }
 0x222   :  { %v418_v0 = vmax.f32 %v396_v62, 0.0 }
 0x223   :  { %435 = vst [vmem:[#allocation8 + $0x78] sm:$0xff] %v419_v63 }
 0x224   :  { %434 = vst [vmem:[#allocation8 + $0x70] sm:$0xff] %v418_v0 }
 0x225   :  { %778 = shalt.err (!%p775_p0)
}
 0x226   :  { %s779_s6 = scalar_lea.hbm %s900_s4, 2048 }
 0x227   :  { %p780_p1 = scmp.ne.s32.totalorder %s900_s4, %s779_s6  ;;  %p783_p2 = scmp.lt.u32.totalorder %s779_s6, %s900_s4 }
 0x229   :  { %p785_p3 = pnand %p783_p2, %p780_p1 }
 0x22b   :  { %788 = shalt.err (!%p785_p3)
}
 0x22c   :  { %447 = dma.vmem_to_hbm [thread:$0]  %s442_s26, 2048, %s900_s4, [#allocation4], %s797_s27, %s797_s27, %s798_s28  }
 0x22d   :  { %793 = dma.done.wait [#allocation4], 2048  }
 0x22e   :  { %794 = vsyncadd [#allocation4], 4294965248 }
 0x22f   :  { %451 = vsyncpa [#allocation3], 1 }
 0x230   :  { %452 = vsyncpa [#allocation6], 1 }
 0x231   :  { %453 = vsyncpa [#allocation4], 1 }

</bundles_post_ra>
